<compile_context>
chip_gen: v6e
topology: v6e:2x2x1
jax: 0.10.0
libtpu: 0.0.40
codegen_flags: <defaults>
</compile_context>

<pallas_src>
import jax
import jax.numpy as jnp
from jax.experimental import pallas as pl
from jax.experimental.pallas import tpu as pltpu

_LANE = 128          # TPU lane width
_MAX_TILE_B = 8192   # lanes per block; 2*8192*4B doubled-buffered ~ 128 KiB << VMEM on all chips


def mlp_kernel(p_ref, x_ref, o_ref):
    # x_ref: (2, TILE_B) lane-dense activations; p_ref: (27,) f32 scalars in SMEM.
    a0 = x_ref[0:1, :]          # (1, TILE_B)
    a1 = x_ref[1:2, :]          # (1, TILE_B)

    def lin2_relu(h0, h1, off):
        # PyTorch nn.Linear(2,2): y_j = w[j,0]*h0 + w[j,1]*h1 + b_j, then ReLU.
        y0 = p_ref[off + 0] * h0 + p_ref[off + 1] * h1 + p_ref[off + 4]
        y1 = p_ref[off + 2] * h0 + p_ref[off + 3] * h1 + p_ref[off + 5]
        return jnp.maximum(y0, 0.0), jnp.maximum(y1, 0.0)

    h0, h1 = lin2_relu(a0, a1, 0)    # hidden  + relu
    h0, h1 = lin2_relu(h0, h1, 6)    # hidden2 + relu ; drop (eval) = identity, extra relu redundant
    h0, h1 = lin2_relu(h0, h1, 12)   # hidden3 + relu
    h0, h1 = lin2_relu(h0, h1, 18)   # hidden4 + relu ; drop1 (eval) = identity, extra relu redundant
    # out: Linear(2,1), no activation.
    o_ref[...] = p_ref[24] * h0 + p_ref[25] * h1 + p_ref[26]


def pack_params(params):
    """Flatten all weights/biases (PyTorch (out,in) convention) into one f32 vector."""
    flat = []
    for w, b in params:
        flat.append(jnp.ravel(w))   # row-major: [w00, w01, w10, w11] (or [w00, w01] for out layer)
        flat.append(jnp.ravel(b))   # [b0, b1] (or [b0])
    return jnp.concatenate(flat).astype(jnp.float32)   # length 4*6 + 3 = 27


def net_forward(x, params, *, tile_b=_MAX_TILE_B):
    """x: (B, 2) float32 -> (B, 1) float32."""
    B = x.shape[0]
    p = pack_params(params)

    # Batch on lanes: (2, B), zero-padded to a multiple of the lane-dense tile.
    b_pad = max(_LANE, ((B + _LANE - 1) // _LANE) * _LANE)
    tile = min(tile_b, b_pad)
    b_pad = ((b_pad + tile - 1) // tile) * tile
    x_t = jnp.pad(x.T.astype(jnp.float32), ((0, 0), (0, b_pad - B)))   # (2, b_pad)

    grid = (b_pad // tile,)
    out = pl.pallas_call(
        mlp_kernel,
        out_shape=jax.ShapeDtypeStruct((1, b_pad), jnp.float32),
        grid=grid,
        in_specs=[
            pl.BlockSpec(memory_space=pltpu.MemorySpace.SMEM),      # 27 scalars -> SMEM
            pl.BlockSpec((2, tile), lambda i: (0, i)),              # lane-dense activations
        ],
        out_specs=pl.BlockSpec((1, tile), lambda i: (0, i)),        # lane-dense output
        compiler_params=pltpu.CompilerParams(
            dimension_semantics=("parallel",),                      # v7x: shard batch across 2 TCs
        ),
    )(p, x_t)

    return out[0, :B].reshape(B, 1)


def init_params(key):
    """Deterministic init mirroring PyTorch nn.Linear default (uniform +-1/sqrt(fan_in))."""
    def linear_init(k, fan_in, fan_out):
        kw, kb = jax.random.split(k)
        bound = 1.0 / jnp.sqrt(fan_in)
        w = jax.random.uniform(kw, (fan_out, fan_in), jnp.float32, -bound, bound)
        b = jax.random.uniform(kb, (fan_out,), jnp.float32, -bound, bound)
        return w, b

    ks = jax.random.split(key, 5)
    return (
        linear_init(ks[0], 2, 2),   # hidden
        linear_init(ks[1], 2, 2),   # hidden2
        linear_init(ks[2], 2, 2),   # hidden3
        linear_init(ks[3], 2, 2),   # hidden4
        linear_init(ks[4], 2, 1),   # out
    )


def reference_forward(x, params):
    (w1, b1), (w2, b2), (w3, b3), (w4, b4), (wo, bo) = params
    h = jnp.maximum(x @ w1.T + b1, 0.0)
    h = jnp.maximum(h @ w2.T + b2, 0.0)
    h = jnp.maximum(h, 0.0)                 # relu(drop(h)), drop = identity in eval
    h = jnp.maximum(h @ w3.T + b3, 0.0)
    h = jnp.maximum(h @ w4.T + b4, 0.0)
    h = jnp.maximum(h, 0.0)                 # relu(drop1(h)), drop1 = identity in eval
    return h @ wo.T + bo


if __name__ == "__main__":
    key = jax.random.PRNGKey(0)
    k_x, k_p = jax.random.split(key)

    B = 8
    x = jax.random.normal(k_x, (B, 2), jnp.float32)
    params = init_params(k_p)

    y = net_forward(x, params)
    jax.block_until_ready(y)

    y_ref = reference_forward(x, params)
    assert y.shape == (B, 1), y.shape
    assert jnp.allclose(y, y_ref, atol=1e-5, rtol=1e-5), (y, y_ref)

    print("KERNEL_OK")
</pallas_src>

<mosaic_0001>
module attributes {stable_mosaic.version = 11 : i64} {
  func.func @mlp_kernel(%arg0: i32, %arg1: memref<27xf32, #tpu.memory_space<smem>>, %arg2: memref<2x128xf32, #tpu.memory_space<vmem>>, %arg3: memref<1x128xf32, #tpu.memory_space<vmem>>) attributes {dimension_semantics = [#tpu.dimension_semantics<parallel>], iteration_bounds = array<i64: 1>, scalar_prefetch = 0 : i64, scratch_operands = 0 : i64, tpu.core_type = #tpu.core_type<tc>, window_params = [{transform_indices = @transform_0, window_bounds = array<i64: 27>}, {transform_indices = @transform_1, window_bounds = array<i64: 2, 128>}, {transform_indices = @transform_2, window_bounds = array<i64: 1, 128>}]} {
    %c0 = arith.constant 0 : index
    %c0_0 = arith.constant 0 : index
    %0 = vector.load %arg2[%c0, %c0_0] : memref<2x128xf32, #tpu.memory_space<vmem>>, vector<1x128xf32>
    %c1 = arith.constant 1 : index
    %c0_1 = arith.constant 0 : index
    %1 = vector.load %arg2[%c1, %c0_1] : memref<2x128xf32, #tpu.memory_space<vmem>>, vector<1x128xf32>
    %c0_2 = arith.constant 0 : index
    %2 = memref.load %arg1[%c0_2] : memref<27xf32, #tpu.memory_space<smem>>
    %3 = vector.broadcast %2 : f32 to vector<1x128xf32>
    %4 = arith.mulf %3, %0 : vector<1x128xf32>
    %c1_3 = arith.constant 1 : index
    %5 = memref.load %arg1[%c1_3] : memref<27xf32, #tpu.memory_space<smem>>
    %6 = vector.broadcast %5 : f32 to vector<1x128xf32>
    %7 = arith.mulf %6, %1 : vector<1x128xf32>
    %8 = arith.addf %4, %7 : vector<1x128xf32>
    %c4 = arith.constant 4 : index
    %9 = memref.load %arg1[%c4] : memref<27xf32, #tpu.memory_space<smem>>
    %10 = vector.broadcast %9 : f32 to vector<1x128xf32>
    %11 = arith.addf %8, %10 : vector<1x128xf32>
    %c2 = arith.constant 2 : index
    %12 = memref.load %arg1[%c2] : memref<27xf32, #tpu.memory_space<smem>>
    %13 = vector.broadcast %12 : f32 to vector<1x128xf32>
    %14 = arith.mulf %13, %0 : vector<1x128xf32>
    %c3 = arith.constant 3 : index
    %15 = memref.load %arg1[%c3] : memref<27xf32, #tpu.memory_space<smem>>
    %16 = vector.broadcast %15 : f32 to vector<1x128xf32>
    %17 = arith.mulf %16, %1 : vector<1x128xf32>
    %18 = arith.addf %14, %17 : vector<1x128xf32>
    %c5 = arith.constant 5 : index
    %19 = memref.load %arg1[%c5] : memref<27xf32, #tpu.memory_space<smem>>
    %20 = vector.broadcast %19 : f32 to vector<1x128xf32>
    %21 = arith.addf %18, %20 : vector<1x128xf32>
    %cst = arith.constant 0.000000e+00 : f32
    %22 = vector.broadcast %cst : f32 to vector<1x128xf32>
    %23 = arith.maximumf %11, %22 : vector<1x128xf32>
    %cst_4 = arith.constant 0.000000e+00 : f32
    %24 = vector.broadcast %cst_4 : f32 to vector<1x128xf32>
    %25 = arith.maximumf %21, %24 : vector<1x128xf32>
    %c6 = arith.constant 6 : index
    %26 = memref.load %arg1[%c6] : memref<27xf32, #tpu.memory_space<smem>>
    %27 = vector.broadcast %26 : f32 to vector<1x128xf32>
    %28 = arith.mulf %27, %23 : vector<1x128xf32>
    %c7 = arith.constant 7 : index
    %29 = memref.load %arg1[%c7] : memref<27xf32, #tpu.memory_space<smem>>
    %30 = vector.broadcast %29 : f32 to vector<1x128xf32>
    %31 = arith.mulf %30, %25 : vector<1x128xf32>
    %32 = arith.addf %28, %31 : vector<1x128xf32>
    %c10 = arith.constant 10 : index
    %33 = memref.load %arg1[%c10] : memref<27xf32, #tpu.memory_space<smem>>
    %34 = vector.broadcast %33 : f32 to vector<1x128xf32>
    %35 = arith.addf %32, %34 : vector<1x128xf32>
    %c8 = arith.constant 8 : index
    %36 = memref.load %arg1[%c8] : memref<27xf32, #tpu.memory_space<smem>>
    %37 = vector.broadcast %36 : f32 to vector<1x128xf32>
    %38 = arith.mulf %37, %23 : vector<1x128xf32>
    %c9 = arith.constant 9 : index
    %39 = memref.load %arg1[%c9] : memref<27xf32, #tpu.memory_space<smem>>
    %40 = vector.broadcast %39 : f32 to vector<1x128xf32>
    %41 = arith.mulf %40, %25 : vector<1x128xf32>
    %42 = arith.addf %38, %41 : vector<1x128xf32>
    %c11 = arith.constant 11 : index
    %43 = memref.load %arg1[%c11] : memref<27xf32, #tpu.memory_space<smem>>
    %44 = vector.broadcast %43 : f32 to vector<1x128xf32>
    %45 = arith.addf %42, %44 : vector<1x128xf32>
    %cst_5 = arith.constant 0.000000e+00 : f32
    %46 = vector.broadcast %cst_5 : f32 to vector<1x128xf32>
    %47 = arith.maximumf %35, %46 : vector<1x128xf32>
    %cst_6 = arith.constant 0.000000e+00 : f32
    %48 = vector.broadcast %cst_6 : f32 to vector<1x128xf32>
    %49 = arith.maximumf %45, %48 : vector<1x128xf32>
    %c12 = arith.constant 12 : index
    %50 = memref.load %arg1[%c12] : memref<27xf32, #tpu.memory_space<smem>>
    %51 = vector.broadcast %50 : f32 to vector<1x128xf32>
    %52 = arith.mulf %51, %47 : vector<1x128xf32>
    %c13 = arith.constant 13 : index
    %53 = memref.load %arg1[%c13] : memref<27xf32, #tpu.memory_space<smem>>
    %54 = vector.broadcast %53 : f32 to vector<1x128xf32>
    %55 = arith.mulf %54, %49 : vector<1x128xf32>
    %56 = arith.addf %52, %55 : vector<1x128xf32>
    %c16 = arith.constant 16 : index
    %57 = memref.load %arg1[%c16] : memref<27xf32, #tpu.memory_space<smem>>
    %58 = vector.broadcast %57 : f32 to vector<1x128xf32>
    %59 = arith.addf %56, %58 : vector<1x128xf32>
    %c14 = arith.constant 14 : index
    %60 = memref.load %arg1[%c14] : memref<27xf32, #tpu.memory_space<smem>>
    %61 = vector.broadcast %60 : f32 to vector<1x128xf32>
    %62 = arith.mulf %61, %47 : vector<1x128xf32>
    %c15 = arith.constant 15 : index
    %63 = memref.load %arg1[%c15] : memref<27xf32, #tpu.memory_space<smem>>
    %64 = vector.broadcast %63 : f32 to vector<1x128xf32>
    %65 = arith.mulf %64, %49 : vector<1x128xf32>
    %66 = arith.addf %62, %65 : vector<1x128xf32>
    %c17 = arith.constant 17 : index
    %67 = memref.load %arg1[%c17] : memref<27xf32, #tpu.memory_space<smem>>
    %68 = vector.broadcast %67 : f32 to vector<1x128xf32>
    %69 = arith.addf %66, %68 : vector<1x128xf32>
    %cst_7 = arith.constant 0.000000e+00 : f32
    %70 = vector.broadcast %cst_7 : f32 to vector<1x128xf32>
    %71 = arith.maximumf %59, %70 : vector<1x128xf32>
    %cst_8 = arith.constant 0.000000e+00 : f32
    %72 = vector.broadcast %cst_8 : f32 to vector<1x128xf32>
    %73 = arith.maximumf %69, %72 : vector<1x128xf32>
    %c18 = arith.constant 18 : index
    %74 = memref.load %arg1[%c18] : memref<27xf32, #tpu.memory_space<smem>>
    %75 = vector.broadcast %74 : f32 to vector<1x128xf32>
    %76 = arith.mulf %75, %71 : vector<1x128xf32>
    %c19 = arith.constant 19 : index
    %77 = memref.load %arg1[%c19] : memref<27xf32, #tpu.memory_space<smem>>
    %78 = vector.broadcast %77 : f32 to vector<1x128xf32>
    %79 = arith.mulf %78, %73 : vector<1x128xf32>
    %80 = arith.addf %76, %79 : vector<1x128xf32>
    %c22 = arith.constant 22 : index
    %81 = memref.load %arg1[%c22] : memref<27xf32, #tpu.memory_space<smem>>
    %82 = vector.broadcast %81 : f32 to vector<1x128xf32>
    %83 = arith.addf %80, %82 : vector<1x128xf32>
    %c20 = arith.constant 20 : index
    %84 = memref.load %arg1[%c20] : memref<27xf32, #tpu.memory_space<smem>>
    %85 = vector.broadcast %84 : f32 to vector<1x128xf32>
    %86 = arith.mulf %85, %71 : vector<1x128xf32>
    %c21 = arith.constant 21 : index
    %87 = memref.load %arg1[%c21] : memref<27xf32, #tpu.memory_space<smem>>
    %88 = vector.broadcast %87 : f32 to vector<1x128xf32>
    %89 = arith.mulf %88, %73 : vector<1x128xf32>
    %90 = arith.addf %86, %89 : vector<1x128xf32>
    %c23 = arith.constant 23 : index
    %91 = memref.load %arg1[%c23] : memref<27xf32, #tpu.memory_space<smem>>
    %92 = vector.broadcast %91 : f32 to vector<1x128xf32>
    %93 = arith.addf %90, %92 : vector<1x128xf32>
    %cst_9 = arith.constant 0.000000e+00 : f32
    %94 = vector.broadcast %cst_9 : f32 to vector<1x128xf32>
    %95 = arith.maximumf %83, %94 : vector<1x128xf32>
    %cst_10 = arith.constant 0.000000e+00 : f32
    %96 = vector.broadcast %cst_10 : f32 to vector<1x128xf32>
    %97 = arith.maximumf %93, %96 : vector<1x128xf32>
    %c24 = arith.constant 24 : index
    %98 = memref.load %arg1[%c24] : memref<27xf32, #tpu.memory_space<smem>>
    %99 = vector.broadcast %98 : f32 to vector<1x128xf32>
    %100 = arith.mulf %99, %95 : vector<1x128xf32>
    %c25 = arith.constant 25 : index
    %101 = memref.load %arg1[%c25] : memref<27xf32, #tpu.memory_space<smem>>
    %102 = vector.broadcast %101 : f32 to vector<1x128xf32>
    %103 = arith.mulf %102, %97 : vector<1x128xf32>
    %104 = arith.addf %100, %103 : vector<1x128xf32>
    %c26 = arith.constant 26 : index
    %105 = memref.load %arg1[%c26] : memref<27xf32, #tpu.memory_space<smem>>
    %106 = vector.broadcast %105 : f32 to vector<1x128xf32>
    %107 = arith.addf %104, %106 : vector<1x128xf32>
    %c0_11 = arith.constant 0 : index
    %c0_12 = arith.constant 0 : index
    %108 = vector.load %arg3[%c0_11, %c0_12] : memref<1x128xf32, #tpu.memory_space<vmem>>, vector<1x128xf32>
    tpu.vector_store %arg3[%c0_11, %c0_12], %107 {strides = array<i32>} : memref<1x128xf32, #tpu.memory_space<vmem>>, vector<1x128xf32>,
    return
  }
  func.func @transform_0(%arg0: i32) -> i32 {
    %c0_i32 = arith.constant 0 : i32
    %c0_i32_0 = arith.constant 0 : i32
    return %c0_i32 : i32
  }
  func.func @transform_1(%arg0: i32) -> (i32, i32) {
    %c0_i32 = arith.constant 0 : i32
    %c0_i32_0 = arith.constant 0 : i32
    return %c0_i32, %arg0 : i32, i32
  }
  func.func @transform_2(%arg0: i32) -> (i32, i32) {
    %c0_i32 = arith.constant 0 : i32
    %c0_i32_0 = arith.constant 0 : i32
    return %c0_i32, %arg0 : i32, i32
  }
}

</mosaic_0001>

<bundles_post_ra>
// kernel: tpu_custom_call.1
= control target key start
LH: loop header
LB: loop body
LE: loop exit
PB: predicated region body
PF: predicated region fallthrough
CT: control target
= control target key end

     0   :  { %7 = vsyncpa [#allocation5], 0  ;;  %s274_s0 = inlined_call_operand.hbm [shape: f32[27], index: 0, kind: input, shape index: {}]   ;;  %s275_s1 = inlined_call_operand.hbm [shape: f32[2,128], index: 1, kind: input, shape index: {}]   ;;  %s276_s2 = inlined_call_operand.hbm [shape: f32[1,128], index: 2, kind: output, shape index: {}]  }
   0x1   :  { %8 = vsyncpa [#allocation3], 0 }
   0x2   :  { %9 = vsyncpa [#allocation4], 0  ;;  %s235_s9 = smov [#allocation2]   ;;  %s236_s12 = smov [#allocation6]  }
   0x3   :  { %17 = dma.hbm_to_smem %s274_s0, 16, %s235_s9, [#allocation5]  }
   0x4   :  { %s24_s13 = sshll.u32 %s236_s12, 4  ;;  %s25_s13 = int_to_ptr.vmem [resolvable:$true] %s24_s13 }
   0x5   :  { %s197_s14 = scalar_lea.vmem %s25_s13, 32  ;;  %p202_p1 = scmp.lt.s32.totalorder %s25_s13, %s25_s13 }
   0x6   :  { %p198_p0 = scmp.ne.s32.totalorder %s25_s13, %s197_s14  ;;  %p203_p2 = scmp.lt.s32.totalorder %s197_s14, %s197_s14 }
   0x8   :  { %p204_p3 = por %p203_p2, %p202_p1 }
   0xa   :  { %p205_p4 = pnand %p204_p3, %p198_p0 }
   0xc   :  { %208 = shalt.err (!%p205_p4)
}
   0xd   :  { %27 = dma.hbm_to_vmem [thread:$0]  %s275_s1, 32, %s25_s13, [#allocation3]  }
   0xe   :  { %229 = dma.done.wait [#allocation5], 16  }
   0xf   :  { %230 = vsyncadd [#allocation5], 4294967280 }
  0x10   :  { %231 = dma.done.wait [#allocation3], 32  }
  0x11   :  { %232 = vsyncadd [#allocation3], 4294967264 }
  0x12   :  { %34 = sfence }
  0x13   :  { %s37_s0 = sld [smem:[#allocation2]]  ;;  %v35_v0 = vld [vmem:[#allocation6] sm:$0x1]  ;;  %v36_v1 = vld [vmem:[#allocation6 + $0x1] sm:$0x1]  ;;  %s237_s14 = smov [#allocation7]  }
  0x14   :  { %s152_s17 = sld [smem:[#allocation2 + $0x1]]  ;;  %s142_s15 = sshll.u32 %s237_s14, 4  ;;  %s143_s15 = int_to_ptr.vmem [resolvable:$true] %s142_s15 }
  0x15   :  { %s153_s18 = sld [smem:[#allocation2 + $0x4]]  ;;  %s209_s16 = scalar_lea.vmem %s143_s15, 16 }
  0x16   :  { %s154_s19 = sld [smem:[#allocation2 + $0x2]]  ;;  %p210_p5 = scmp.ne.s32.totalorder %s143_s15, %s209_s16 }
  0x17   :  { %s155_s20 = sld [smem:[#allocation2 + $0x3]]  ;;  %p214_p6 = scmp.lt.s32.totalorder %s143_s15, %s143_s15 }
  0x18   :  { %s156_s21 = sld [smem:[#allocation2 + $0x5]] }
  0x19   :  { %v38_v2 = vstv %s37_s0  ;;  %s157_s22 = sld [smem:[#allocation2 + $0x6]]  ;;  %s213_s0 = scalar_lea.vmem %s143_s15, 32 }
  0x1a   :  { %v39_v3 = vmul.f32 %v38_v2, %v35_v0  ;;  %v41_v4 = vstv %s152_s17  ;;  %s158_s23 = sld [smem:[#allocation2 + $0x7]]  ;;  %p215_p7 = scmp.lt.s32.totalorder %s213_s0, %s209_s16 }
  0x1b   :  { %v42_v5 = vmul.f32 %v41_v4, %v36_v1  ;;  %v45_v6 = vstv %s153_s18  ;;  %s160_s1 = sld [smem:[#allocation2 + $0x8]] }
  0x1c   :  { %v48_v7 = vstv %s154_s19  ;;  %s161_s24 = sld [smem:[#allocation2 + $0x9]]  ;;  %p216_p8 = por %p215_p7, %p214_p6 }
  0x1d   :  { %v43_v8 = vadd.f32 %v42_v5, %v39_v3  ;;  %v49_v9 = vmul.f32 %v48_v7, %v35_v0  ;;  %v51_v10 = vstv %s155_s20  ;;  %s159_s25 = sld [smem:[#allocation2 + $0xa]] }
  0x1e   :  { %v52_v11 = vmul.f32 %v51_v10, %v36_v1  ;;  %v55_v13 = vstv %s156_s21  ;;  %s162_s26 = sld [smem:[#allocation2 + $0xb]]  ;;  %p217_p9 = pnand %p216_p8, %p210_p5 }
  0x1f   :  { %v46_v12 = vadd.f32 %v45_v6, %v43_v8  ;;  %s259_s27 = sld [smem:[#allocation2 + $0xc]]  ;;  %v60_v16 = vstv %s157_s22 }
  0x20   :  { %v53_v14 = vadd.f32 %v52_v11, %v49_v9  ;;  %s261_s28 = sld [smem:[#allocation2 + $0xd]]  ;;  %v63_v19 = vstv %s158_s23 }
  0x21   :  { %v57_v15 = vmax.f32 %v46_v12, 0.0  ;;  %v70_v18 = vstv %s160_s1  ;;  %s166_s29 = sld [smem:[#allocation2 + $0xe]] }
  0x22   :  { %v56_v17 = vadd.f32 %v55_v13, %v53_v14  ;;  %v73_v20 = vstv %s161_s24  ;;  %s167_s30 = sld [smem:[#allocation2 + $0xf]] }
  0x23   :  { %v61_v22 = vmul.f32 %v60_v16, %v57_v15  ;;  %v71_v23 = vmul.f32 %v70_v18, %v57_v15  ;;  %s165_s3 = sld [smem:[#allocation2 + $0x10]]  ;;  %v67_v26 = vstv %s159_s25 }
  0x24   :  { %v58_v21 = vmax.f32 %v56_v17, 0.0  ;;  %v77_v27 = vstv %s162_s26  ;;  %s168_s4 = sld [smem:[#allocation2 + $0x11]] }
  0x25   :  { %s263_s5 = sld [smem:[#allocation2 + $0x12]]  ;;  %v82_v32 = vstv %s259_s27 }
  0x26   :  { %v64_v24 = vmul.f32 %v63_v19, %v58_v21  ;;  %v74_v25 = vmul.f32 %v73_v20, %v58_v21  ;;  %s265_s6 = sld [smem:[#allocation2 + $0x13]]  ;;  %v85_v33 = vstv %s261_s28 }
  0x27   :  { %s172_s7 = sld [smem:[#allocation2 + $0x14]]  ;;  %v92_v34 = vstv %s166_s29 }
  0x28   :  { %v65_v28 = vadd.f32 %v64_v24, %v61_v22  ;;  %v75_v29 = vadd.f32 %v74_v25, %v71_v23  ;;  %v95_v35 = vstv %s167_s30  ;;  %s173_s8 = sld [smem:[#allocation2 + $0x15]] }
  0x29   :  { %s171_s9 = sld [smem:[#allocation2 + $0x16]]  ;;  %v89_v42 = vstv %s165_s3 }
  0x2a   :  { %v68_v30 = vadd.f32 %v67_v26, %v65_v28  ;;  %v78_v31 = vadd.f32 %v77_v27, %v75_v29  ;;  %v99_v43 = vstv %s168_s4  ;;  %s174_s10 = sld [smem:[#allocation2 + $0x17]] }
  0x2b   :  { %s175_s11 = sld [smem:[#allocation2 + $0x18]]  ;;  %v104_v48 = vstv %s263_s5 }
  0x2c   :  { %v79_v36 = vmax.f32 %v68_v30, 0.0  ;;  %v80_v37 = vmax.f32 %v78_v31, 0.0  ;;  %v107_v49 = vstv %s265_s6  ;;  %s176_s12 = sld [smem:[#allocation2 + $0x19]] }
  0x2d   :  { %v114_v50 = vstv %s172_s7  ;;  %s177_s13 = sld [smem:[#allocation2 + $0x1a]] }
  0x2e   :  { %v83_v38 = vmul.f32 %v82_v32, %v79_v36  ;;  %v86_v39 = vmul.f32 %v85_v33, %v80_v37  ;;  %v93_v40 = vmul.f32 %v92_v34, %v79_v36  ;;  %v96_v41 = vmul.f32 %v95_v35, %v80_v37 }
  0x2f   :  { %v117_v51 = vstv %s173_s8  ;;  %v111_v58 = vstv %s171_s9 }
  0x30   :  { %v87_v44 = vadd.f32 %v86_v39, %v83_v38  ;;  %v97_v45 = vadd.f32 %v96_v41, %v93_v40  ;;  %v121_v59 = vstv %s174_s10 }
  0x31   :  { %v126_v0 = vstv %s175_s11 }
  0x32   :  { %v90_v46 = vadd.f32 %v89_v42, %v87_v44  ;;  %v100_v47 = vadd.f32 %v99_v43, %v97_v45  ;;  %v129_v1 = vstv %s176_s12 }
  0x33   :  { %v133_v6 = vstv %s177_s13 }
  0x34   :  { %v101_v52 = vmax.f32 %v90_v46, 0.0  ;;  %v102_v53 = vmax.f32 %v100_v47, 0.0 }
  0x36   :  { %v105_v54 = vmul.f32 %v104_v48, %v101_v52  ;;  %v108_v55 = vmul.f32 %v107_v49, %v102_v53  ;;  %v115_v56 = vmul.f32 %v114_v50, %v101_v52  ;;  %v118_v57 = vmul.f32 %v117_v51, %v102_v53 }
  0x38   :  { %v109_v60 = vadd.f32 %v108_v55, %v105_v54  ;;  %v119_v61 = vadd.f32 %v118_v57, %v115_v56 }
  0x3a   :  { %v112_v62 = vadd.f32 %v111_v58, %v109_v60  ;;  %v122_v63 = vadd.f32 %v121_v59, %v119_v61 }
  0x3c   :  { %v123_v2 = vmax.f32 %v112_v62, 0.0  ;;  %v124_v3 = vmax.f32 %v122_v63, 0.0 }
  0x3e   :  { %v127_v4 = vmul.f32 %v126_v0, %v123_v2  ;;  %v130_v5 = vmul.f32 %v129_v1, %v124_v3 }
  0x40   :  { %v131_v7 = vadd.f32 %v130_v5, %v127_v4 }
  0x42   :  { %v134_v8 = vadd.f32 %v133_v6, %v131_v7 }
  0x44   :  { %135 = vst [vmem:[#allocation7] sm:$0x1] %v134_v8 }
  0x45   :  { %220 = shalt.err (!%p217_p9)
}
  0x46   :  { %145 = dma.vmem_to_hbm [thread:$0]  %s143_s15, 16, %s276_s2, [#allocation4]  }
  0x47   :  { %233 = dma.done.wait [#allocation4], 16  }
  0x48   :  { %234 = vsyncadd [#allocation4], 4294967280 }
  0x49   :  { %149 = vsyncpa [#allocation3], 1 }
  0x4a   :  { %150 = vsyncpa [#allocation4], 1 }
  0x4b   :  { %151 = vsyncpa [#allocation5], 1 }

</bundles_post_ra>
